<compile_context>
chip_gen: v7x
topology: tpu7x:2x2x1
jax: 0.10.0
libtpu: 0.0.40
codegen_flags: <defaults>
</compile_context>

<pallas_src>
import math

import jax
import jax.numpy as jnp
from jax.experimental import pallas as pl
from jax.experimental.pallas import tpu as pltpu

STATE_SIZE = 8
HIDDEN = 64
OUTPUT_SIZE = 4
DEFAULT_TILE_B = 1024  # lane-tile of the batch axis; multiple of 128, tiny VMEM footprint


def _round_up(n, m):
    return ((n + m - 1) // m) * m


def dqn_kernel(x_ref, w1_ref, b1_ref, w2_ref, b2_ref, w3_ref, b3_ref, o_ref):
    # x_ref: (STATE_SIZE, tile_b) bf16  |  weights [out, in] bf16  |  biases [out, 1] f32
    x = x_ref[...]

    h1 = jnp.dot(w1_ref[...], x, preferred_element_type=jnp.float32) + b1_ref[...]
    h1 = jnp.maximum(h1, 0.0).astype(jnp.bfloat16)          # relu(fc1): (HIDDEN, tile_b)

    h2 = jnp.dot(w2_ref[...], h1, preferred_element_type=jnp.float32) + b2_ref[...]
    h2 = jnp.maximum(h2, 0.0).astype(jnp.bfloat16)          # relu(fc2): (HIDDEN, tile_b)

    o_ref[...] = (jnp.dot(w3_ref[...], h2, preferred_element_type=jnp.float32)
                  + b3_ref[...])                             # fc3: (OUTPUT_SIZE, tile_b)


def dqn_forward(x, params, *, tile_b=DEFAULT_TILE_B):
    """x: any shape whose flattened size is a multiple of STATE_SIZE (like PyTorch view)."""
    # bf16 MXU operands (cast once in the wrapper); f32 accumulation inside the kernel.
    x2d = x.reshape(-1, STATE_SIZE).astype(jnp.bfloat16)
    B = x2d.shape[0]
    w1, b1, w2, b2, w3, b3 = params

    w1 = w1.astype(jnp.bfloat16)     # (HIDDEN, STATE_SIZE)   -- PyTorch-native [out, in]
    w2 = w2.astype(jnp.bfloat16)     # (HIDDEN, HIDDEN)
    w3 = w3.astype(jnp.bfloat16)     # (OUTPUT_SIZE, HIDDEN)
    b1 = b1.astype(jnp.float32)      # (HIDDEN, 1)            -- column vectors: broadcast
    b2 = b2.astype(jnp.float32)      # (HIDDEN, 1)               along the batch/lane axis
    b3 = b3.astype(jnp.float32)      # (OUTPUT_SIZE, 1)

    # Batch tile: multiple of 128 lanes, never bigger than the (padded) batch.
    tile_b = max(128, _round_up(min(tile_b, _round_up(B, 128)), 128))
    Bp = _round_up(B, tile_b)
    if Bp != B:
        x2d = jnp.pad(x2d, ((0, Bp - B), (0, 0)))
    xT = x2d.T                        # (STATE_SIZE, Bp): batch on lanes
    grid = (Bp // tile_b,)

    param_bytes = sum(int(a.size) * a.dtype.itemsize for a in (w1, b1, w2, b2, w3, b3))
    cost = pl.CostEstimate(
        flops=2 * Bp * (STATE_SIZE * HIDDEN + HIDDEN * HIDDEN + HIDDEN * OUTPUT_SIZE),
        transcendentals=0,
        bytes_accessed=Bp * (STATE_SIZE * 2 + OUTPUT_SIZE * 4) + param_bytes,
    )

    const = lambda i: (0, 0)  # params stay VMEM-resident across all grid iterations
    const_buf = pl.Buffered(1)  # no second buffer for constant-index operands

    outT = pl.pallas_call(
        dqn_kernel,
        out_shape=jax.ShapeDtypeStruct((OUTPUT_SIZE, Bp), jnp.float32),
        grid=grid,
        in_specs=[
            pl.BlockSpec((STATE_SIZE, tile_b), lambda i: (0, i)),
            pl.BlockSpec((HIDDEN, STATE_SIZE), const, pipeline_mode=const_buf),
            pl.BlockSpec((HIDDEN, 1), const, pipeline_mode=const_buf),
            pl.BlockSpec((HIDDEN, HIDDEN), const, pipeline_mode=const_buf),
            pl.BlockSpec((HIDDEN, 1), const, pipeline_mode=const_buf),
            pl.BlockSpec((OUTPUT_SIZE, HIDDEN), const, pipeline_mode=const_buf),
            pl.BlockSpec((OUTPUT_SIZE, 1), const, pipeline_mode=const_buf),
        ],
        out_specs=pl.BlockSpec((OUTPUT_SIZE, tile_b), lambda i: (0, i)),
        compiler_params=pltpu.CompilerParams(
            dimension_semantics=("parallel",),  # v7x: shard batch tiles across both TCs
        ),
        cost_estimate=cost,
    )(xT, w1, b1, w2, b2, w3, b3)

    return outT.T[:B]                 # back to (B, OUTPUT_SIZE)


def init_params(key):
    """Deterministic PyTorch-style nn.Linear init (uniform +-1/sqrt(fan_in)), [out, in] layout."""
    def linear(key, fan_in, fan_out):
        kw, kb = jax.random.split(key)
        bound = 1.0 / math.sqrt(fan_in)
        w = jax.random.uniform(kw, (fan_out, fan_in), jnp.float32, -bound, bound)
        b = jax.random.uniform(kb, (fan_out, 1), jnp.float32, -bound, bound)
        return w, b

    k1, k2, k3 = jax.random.split(key, 3)
    w1, b1 = linear(k1, STATE_SIZE, HIDDEN)
    w2, b2 = linear(k2, HIDDEN, HIDDEN)
    w3, b3 = linear(k3, HIDDEN, OUTPUT_SIZE)
    return (w1, b1, w2, b2, w3, b3)


def dqn_reference(x, params):
    """Pure-JAX f32 reference of the PyTorch forward."""
    x2d = x.reshape(-1, STATE_SIZE).astype(jnp.float32)
    w1, b1, w2, b2, w3, b3 = params
    h1 = jnp.maximum(x2d @ w1.T + b1[:, 0], 0.0)
    h2 = jnp.maximum(h1 @ w2.T + b2[:, 0], 0.0)
    return h2 @ w3.T + b3[:, 0]


if __name__ == "__main__":
    key = jax.random.PRNGKey(0)
    kx, kp = jax.random.split(key)

    params = init_params(kp)

    # Small batch of 8 states.
    x = jax.random.normal(kx, (8, STATE_SIZE), jnp.float32)
    out = jax.block_until_ready(dqn_forward(x, params))
    ref = jax.block_until_ready(dqn_reference(x, params))
    assert out.shape == (8, OUTPUT_SIZE)
    # bf16 MXU operands with f32 accumulation vs f32 reference -> loose-ish tolerance.
    assert jnp.allclose(out, ref, atol=1e-2, rtol=1e-2)

    # Ragged batch (exercises the padded-tail path).
    x2 = jax.random.normal(kx, (10, STATE_SIZE), jnp.float32)
    out2 = jax.block_until_ready(dqn_forward(x2, params))
    ref2 = jax.block_until_ready(dqn_reference(x2, params))
    assert out2.shape == (10, OUTPUT_SIZE)
    assert jnp.allclose(out2, ref2, atol=1e-2, rtol=1e-2)

    print("KERNEL_OK")
</pallas_src>

<mosaic_0001>
module attributes {stable_mosaic.version = 11 : i64} {
  func.func @dqn_kernel(%arg0: i32, %arg1: memref<8x128xbf16, #tpu.memory_space<vmem>>, %arg2: memref<64x8xbf16, #tpu.memory_space<vmem>>, %arg3: memref<64x1xf32, #tpu.memory_space<vmem>>, %arg4: memref<64x64xbf16, #tpu.memory_space<vmem>>, %arg5: memref<64x1xf32, #tpu.memory_space<vmem>>, %arg6: memref<4x64xbf16, #tpu.memory_space<vmem>>, %arg7: memref<4x1xf32, #tpu.memory_space<vmem>>, %arg8: memref<4x128xf32, #tpu.memory_space<vmem>>) attributes {dimension_semantics = [#tpu.dimension_semantics<parallel>], iteration_bounds = array<i64: 1>, scalar_prefetch = 0 : i64, scratch_operands = 0 : i64, tpu.core_type = #tpu.core_type<tc>, window_params = [{transform_indices = @transform_0, window_bounds = array<i64: 8, 128>}, {pipeline_mode = #tpu.pipeline_mode<synchronous>, transform_indices = @transform_1, window_bounds = array<i64: 64, 8>}, {pipeline_mode = #tpu.pipeline_mode<synchronous>, transform_indices = @transform_2, window_bounds = array<i64: 64, 1>}, {pipeline_mode = #tpu.pipeline_mode<synchronous>, transform_indices = @transform_3, window_bounds = array<i64: 64, 64>}, {pipeline_mode = #tpu.pipeline_mode<synchronous>, transform_indices = @transform_4, window_bounds = array<i64: 64, 1>}, {pipeline_mode = #tpu.pipeline_mode<synchronous>, transform_indices = @transform_5, window_bounds = array<i64: 4, 64>}, {pipeline_mode = #tpu.pipeline_mode<synchronous>, transform_indices = @transform_6, window_bounds = array<i64: 4, 1>}, {transform_indices = @transform_7, window_bounds = array<i64: 4, 128>}]} {
    %c0 = arith.constant 0 : index
    %c0_0 = arith.constant 0 : index
    %0 = vector.load %arg1[%c0, %c0_0] : memref<8x128xbf16, #tpu.memory_space<vmem>>, vector<8x128xbf16>
    %c0_1 = arith.constant 0 : index
    %c0_2 = arith.constant 0 : index
    %1 = vector.load %arg2[%c0_1, %c0_2] : memref<64x8xbf16, #tpu.memory_space<vmem>>, vector<64x8xbf16>
    %cst = arith.constant dense<0.000000e+00> : vector<64x128xf32>
    %2 = tpu.matmul %1, %0, %cst {dimension_numbers = #tpu.dot_dimension_numbers<[1], [0], [0], [1], [0, 0, 1, 1], [], []>} : vector<64x8xbf16>, vector<8x128xbf16>, vector<64x128xf32> -> vector<64x128xf32>
    %c0_3 = arith.constant 0 : index
    %c0_4 = arith.constant 0 : index
    %3 = vector.load %arg3[%c0_3, %c0_4] : memref<64x1xf32, #tpu.memory_space<vmem>>, vector<64x1xf32>
    %4 = vector.broadcast %3 : vector<64x1xf32> to vector<64x128xf32>
    %5 = arith.addf %2, %4 : vector<64x128xf32>
    %cst_5 = arith.constant 0.000000e+00 : f32
    %6 = vector.broadcast %cst_5 : f32 to vector<64x128xf32>
    %7 = arith.maximumf %5, %6 : vector<64x128xf32>
    %8 = arith.truncf %7 : vector<64x128xf32> to vector<64x128xbf16>
    %c0_6 = arith.constant 0 : index
    %c0_7 = arith.constant 0 : index
    %9 = vector.load %arg4[%c0_6, %c0_7] : memref<64x64xbf16, #tpu.memory_space<vmem>>, vector<64x64xbf16>
    %cst_8 = arith.constant dense<0.000000e+00> : vector<64x128xf32>
    %10 = tpu.matmul %9, %8, %cst_8 {dimension_numbers = #tpu.dot_dimension_numbers<[1], [0], [0], [1], [0, 0, 1, 1], [], []>} : vector<64x64xbf16>, vector<64x128xbf16>, vector<64x128xf32> -> vector<64x128xf32>
    %c0_9 = arith.constant 0 : index
    %c0_10 = arith.constant 0 : index
    %11 = vector.load %arg5[%c0_9, %c0_10] : memref<64x1xf32, #tpu.memory_space<vmem>>, vector<64x1xf32>
    %12 = vector.broadcast %11 : vector<64x1xf32> to vector<64x128xf32>
    %13 = arith.addf %10, %12 : vector<64x128xf32>
    %cst_11 = arith.constant 0.000000e+00 : f32
    %14 = vector.broadcast %cst_11 : f32 to vector<64x128xf32>
    %15 = arith.maximumf %13, %14 : vector<64x128xf32>
    %16 = arith.truncf %15 : vector<64x128xf32> to vector<64x128xbf16>
    %c0_12 = arith.constant 0 : index
    %c0_13 = arith.constant 0 : index
    %17 = vector.load %arg6[%c0_12, %c0_13] : memref<4x64xbf16, #tpu.memory_space<vmem>>, vector<4x64xbf16>
    %cst_14 = arith.constant dense<0.000000e+00> : vector<4x128xf32>
    %18 = tpu.matmul %17, %16, %cst_14 {dimension_numbers = #tpu.dot_dimension_numbers<[1], [0], [0], [1], [0, 0, 1, 1], [], []>} : vector<4x64xbf16>, vector<64x128xbf16>, vector<4x128xf32> -> vector<4x128xf32>
    %c0_15 = arith.constant 0 : index
    %c0_16 = arith.constant 0 : index
    %19 = vector.load %arg7[%c0_15, %c0_16] : memref<4x1xf32, #tpu.memory_space<vmem>>, vector<4x1xf32>
    %20 = vector.broadcast %19 : vector<4x1xf32> to vector<4x128xf32>
    %21 = arith.addf %18, %20 : vector<4x128xf32>
    %c0_17 = arith.constant 0 : index
    %c0_18 = arith.constant 0 : index
    %22 = vector.load %arg8[%c0_17, %c0_18] : memref<4x128xf32, #tpu.memory_space<vmem>>, vector<4x128xf32>
    tpu.vector_store %arg8[%c0_17, %c0_18], %21 {strides = array<i32>} : memref<4x128xf32, #tpu.memory_space<vmem>>, vector<4x128xf32>,
    return
  }
  func.func @transform_0(%arg0: i32) -> (i32, i32) {
    %c0_i32 = arith.constant 0 : i32
    %c0_i32_0 = arith.constant 0 : i32
    return %c0_i32, %arg0 : i32, i32
  }
  func.func @transform_1(%arg0: i32) -> (i32, i32) {
    %c0_i32 = arith.constant 0 : i32
    %c0_i32_0 = arith.constant 0 : i32
    %c0_i32_1 = arith.constant 0 : i32
    return %c0_i32, %c0_i32_0 : i32, i32
  }
  func.func @transform_2(%arg0: i32) -> (i32, i32) {
    %c0_i32 = arith.constant 0 : i32
    %c0_i32_0 = arith.constant 0 : i32
    %c0_i32_1 = arith.constant 0 : i32
    return %c0_i32, %c0_i32_0 : i32, i32
  }
  func.func @transform_3(%arg0: i32) -> (i32, i32) {
    %c0_i32 = arith.constant 0 : i32
    %c0_i32_0 = arith.constant 0 : i32
    %c0_i32_1 = arith.constant 0 : i32
    return %c0_i32, %c0_i32_0 : i32, i32
  }
  func.func @transform_4(%arg0: i32) -> (i32, i32) {
    %c0_i32 = arith.constant 0 : i32
    %c0_i32_0 = arith.constant 0 : i32
    %c0_i32_1 = arith.constant 0 : i32
    return %c0_i32, %c0_i32_0 : i32, i32
  }
  func.func @transform_5(%arg0: i32) -> (i32, i32) {
    %c0_i32 = arith.constant 0 : i32
    %c0_i32_0 = arith.constant 0 : i32
    %c0_i32_1 = arith.constant 0 : i32
    return %c0_i32, %c0_i32_0 : i32, i32
  }
  func.func @transform_6(%arg0: i32) -> (i32, i32) {
    %c0_i32 = arith.constant 0 : i32
    %c0_i32_0 = arith.constant 0 : i32
    %c0_i32_1 = arith.constant 0 : i32
    return %c0_i32, %c0_i32_0 : i32, i32
  }
  func.func @transform_7(%arg0: i32) -> (i32, i32) {
    %c0_i32 = arith.constant 0 : i32
    %c0_i32_0 = arith.constant 0 : i32
    return %c0_i32, %arg0 : i32, i32
  }
}

</mosaic_0001>

<bundles_post_ra>
// kernel: tpu_custom_call.1
= control target key start
LH: loop header
LB: loop body
LE: loop exit
PB: predicated region body
PF: predicated region fallthrough
CT: control target
= control target key end

     0   :  { %vm118_vm0 = vcmask 1043456   ;;  %vm105_vm1 = vcmask 64512   ;;  %v542_v5 = vmov 0   ;;  %s688_s0 = inlined_call_operand.vmem [shape: bf16[8,128], index: 0, kind: input, shape index: {}]   ;;  %s689_s1 = inlined_call_operand.vmem [shape: bf16[64,8], index: 1, kind: input, shape index: {}]   ;;  %s690_s2 = inlined_call_operand.vmem [shape: f32[64,1], index: 2, kind: input, shape index: {}]   ;;  %s691_s3 = inlined_call_operand.vmem [shape: bf16[64,64], index: 3, kind: input, shape index: {}]   ;;  %s692_s4 = inlined_call_operand.vmem [shape: f32[64,1], index: 4, kind: input, shape index: {}]   ;;  %s693_s5 = inlined_call_operand.vmem [shape: bf16[4,64], index: 5, kind: input, shape index: {}]   ;;  %s694_s6 = inlined_call_operand.vmem [shape: f32[4,1], index: 6, kind: input, shape index: {}]   ;;  %s695_s7 = inlined_call_operand.hbm [shape: f32[4,128], index: 7, kind: output, shape index: {}]  }
   0x1   :  { %v28_v0 = vld [vmem:[%s688_s0] sm:$0xf]  ;;  %v511_v3 = vld [vmem:[%s689_s1 + $0x8] sm:$0xff]   ;;  %v512_v4 = vld [vmem:[%s689_s1 + $0x10] sm:$0xff]   ;;  %508 = vset.pattern.permute.xlu0 %v542_v5  ;;  %509 = vset.pattern.permute.xlu1 %v542_v5 }
   0x2   :  { %v510_v1 = vld [vmem:[%s689_s1] sm:$0xff]   ;;  %503 = vmatprep.subr.msk.bf16.mxu0 %vm118_vm0, %v28_v0  ;;  %v120_v2 = vsel %vm118_vm0, %v28_v0, 0  ;;  %v39_v7 = vld [vmem:[%s690_s2 + $0x10] sm:$0xff]  ;;  %v38_v8 = vld [vmem:[%s690_s2 + $0x8] sm:$0xff] }
   0x3   :  { %466 = vmatpush3.bf16.msra.mxu0 %v120_v2  ;;  %467 = vmatprep.mubr.msk.bf16.mxu0 %vm105_vm1, %v510_v1  ;;  %v37_v6 = vld [vmem:[%s690_s2] sm:$0xff]  ;;  %v40_v9 = vld [vmem:[%s690_s2 + $0x18] sm:$0xff]  ;;  %v42_v12 = vld [vmem:[%s690_s2 + $0x28] sm:$0xff] }
   0x4   :  { %47 = vperm.xlu0 %508, %v37_v6   ;;  %57 = vperm.xlu1 %509, %v39_v7   ;;  %v513_v10 = vld [vmem:[%s689_s1 + $0x18] sm:$0xff]   ;;  %v41_v11 = vld [vmem:[%s690_s2 + $0x20] sm:$0xff] }
   0x6   :  { %468 = vmatmul.mubr.msk.bf16.vlgmr.msra.gmra.mrb[0].mxu0 %vm105_vm1, %v511_v3 }
   0x7   :  { %471 = vmatprep.mubr.msk.bf16.mxu0 %vm105_vm1, %v512_v4 }
   0x8   :  { %52 = vperm.xlu0 %508, %v38_v8   ;;  %62 = vperm.xlu1 %509, %v40_v9  }
   0xc   :  { %67 = vperm.xlu0 %508, %v41_v11  }
   0xe   :  { %472 = vmatmul.mubr.msk.bf16.gmra.mrb[4].mxu0 %vm105_vm1, %v513_v10 }
   0xf   :  { %12 = vsyncpa [#allocation3], 0  ;;  %v43_v13 = vld [vmem:[%s690_s2 + $0x30] sm:$0xff]  ;;  %72 = vperm.xlu1 %509, %v42_v12   ;;  %v44_v14 = vld [vmem:[%s690_s2 + $0x38] sm:$0xff]  ;;  %vm275_vm2 = vcmask 523264   ;;  %v543_v0 = vmov 0.0  }
  0x10   :  { %77 = vperm.xlu0 %508, %v43_v13   ;;  %v207_v15 = vld [vmem:[%s692_s4] sm:$0xff]  ;;  %v208_v16 = vld [vmem:[%s692_s4 + $0x8] sm:$0xff]  ;;  %v209_v17 = vld [vmem:[%s692_s4 + $0x10] sm:$0xff]  ;;  %491 = vmatprep.subr.bf16.mxu0 %v543_v0  ;;  %vm544_vm3 = vmmov 0   ;;  %s545_s24 = smov [#allocation2]  }
  0x11   :  { %v210_v18 = vld [vmem:[%s692_s4 + $0x18] sm:$0xff]  ;;  %v211_v19 = vld [vmem:[%s692_s4 + $0x20] sm:$0xff]  ;;  %v212_v20 = vld [vmem:[%s692_s4 + $0x28] sm:$0xff]  ;;  %499 = vmatprep.mubr.msk.bf16.mxu0 %vm544_vm3, %v543_v0  ;;  %s422_s25 = sshll.u32 %s545_s24, 4  ;;  %s423_s25 = int_to_ptr.vmem [resolvable:$true] %s422_s25 }
  0x12   :  { %v213_v21 = vld [vmem:[%s692_s4 + $0x30] sm:$0xff]  ;;  %v214_v22 = vld [vmem:[%s692_s4 + $0x38] sm:$0xff]  ;;  %v366_v23 = vld [vmem:[%s694_s6] sm:$0xf]  ;;  %s518_s26 = scalar_lea.vmem %s423_s25, 64  ;;  %p523_p1 = scmp.lt.s32.totalorder %s423_s25, %s423_s25 }
  0x13   :  { %82 = vperm.xlu1 %509, %v44_v14   ;;  %v514_v24 = vld [vmem:[%s691_s3] sm:$0xff]   ;;  %v515_v61 = vld [vmem:[%s691_s3 + $0x8] sm:$0xff]   ;;  %v516_v62 = vld [vmem:[%s691_s3 + $0x10] sm:$0xff]   ;;  %p519_p0 = scmp.ne.s32.totalorder %s423_s25, %s518_s26  ;;  %p524_p2 = scmp.lt.s32.totalorder %s518_s26, %s518_s26 }
  0x14   :  { %217 = vperm.xlu0 %508, %v207_v15   ;;  %483 = vmatprep.mubr.msk.bf16.mxu1 %vm275_vm2, %v514_v24  ;;  %v517_v63 = vld [vmem:[%s691_s3 + $0x18] sm:$0xff]  }
  0x15   :  { %p525_p3 = por %p524_p2, %p523_p1 }
  0x17   :  { %222 = vperm.xlu1 %509, %v208_v16   ;;  %p526_p4 = pnand %p525_p3, %p519_p0 }
  0x18   :  { %227 = vperm.xlu0 %508, %v209_v17  }
  0x1b   :  { %232 = vperm.xlu1 %509, %v210_v18  }
  0x1c   :  { %237 = vperm.xlu0 %508, %v211_v19  }
  0x1f   :  { %242 = vperm.xlu1 %509, %v212_v20  }
  0x20   :  { %247 = vperm.xlu0 %508, %v213_v21  }
  0x23   :  { %252 = vperm.xlu1 %509, %v214_v22  }
  0x24   :  { %369 = vperm.xlu0 %508, %v366_v23  }
  0x83   :  { %v48_v25 = vpop.permute.xlu0 %47  ;;  %v58_v26 = vpop.permute.xlu1 %57 }
  0x87   :  { %v53_v27 = vpop.permute.xlu0 %52  ;;  %v63_v28 = vpop.permute.xlu1 %62 }
  0x8b   :  { %v68_v32 = vpop.permute.xlu0 %67 }
  0x8e   :  { %v73_v37 = vpop.permute.xlu1 %72 }
  0x8f   :  { %v78_v44 = vpop.permute.xlu0 %77 }
  0x92   :  { %v83_v49 = vpop.permute.xlu1 %82 }
  0x93   :  { %v218_v1 = vpop.permute.xlu0 %217 }
  0x96   :  { %v223_v2 = vpop.permute.xlu1 %222 }
  0x97   :  { %v228_v3 = vpop.permute.xlu0 %227 }
  0x9a   :  { %v233_v4 = vpop.permute.xlu1 %232 }
  0x9b   :  { %v238_v8 = vpop.permute.xlu0 %237 }
  0x9e   :  { %v243_v13 = vpop.permute.xlu1 %242 }
  0x9f   :  { %v248_v20 = vpop.permute.xlu0 %247 }
  0xd9   :  { %v469_v29 = vpop.f32.mrb[0].mxu0 }
  0xda   :  { %v165_v30 = vadd.f32 %v469_v29, %v58_v26  ;;  %v156_v31 = vpop.f32.mrb[1].mxu0 }
  0xdb   :  { %v157_v33 = vadd.f32 %v156_v31, %v48_v25  ;;  %v470_v34 = vpop.f32.mrb[2].mxu0  ;;  %v253_v25 = vpop.permute.xlu1 %252 }
  0xdc   :  { %v168_v35 = vadd.f32 %v470_v34, %v63_v28  ;;  %v159_v36 = vpop.f32.mrb[3].mxu0  ;;  %v189_v39 = vmax.f32 %v165_v30, 0.0 }
  0xdd   :  { %v160_v38 = vadd.f32 %v159_v36, %v53_v27  ;;  %v187_v41 = vmax.f32 %v157_v33, 0.0 }
  0xde   :  { %v190_v40 = vmax.f32 %v168_v35, 0.0 }
  0xdf   :  { %v188_v42 = vmax.f32 %v160_v38, 0.0  ;;  %v370_v38 = vpop.permute.xlu0 %369 }
  0xe0   :  { %v196_v43 = vpack.c.bf16 %v190_v40, %v189_v39 }
  0xe1   :  { %v473_v45 = vpop.f32.mrb[4].mxu0  ;;  %v195_v46 = vpack.c.bf16 %v188_v42, %v187_v41 }
  0xe2   :  { %v181_v47 = vadd.f32 %v473_v45, %v78_v44  ;;  %v172_v48 = vpop.f32.mrb[5].mxu0 }
  0xe3   :  { %v173_v50 = vadd.f32 %v172_v48, %v68_v32  ;;  %v474_v51 = vpop.f32.mrb[6].mxu0  ;;  %475 = vmatprep.subr.bf16.mxu1 %v195_v46 }
  0xe4   :  { %v184_v52 = vadd.f32 %v474_v51, %v83_v49  ;;  %v175_v53 = vpop.f32.mrb[7].mxu0  ;;  %476 = vmatpush3.bf16.msra.mxu1 %v195_v46  ;;  %v193_v55 = vmax.f32 %v181_v47, 0.0 }
  0xe5   :  { %v176_v54 = vadd.f32 %v175_v53, %v73_v37  ;;  %477 = vmatprep.subr.bf16.mxu1 %v196_v43  ;;  %v191_v57 = vmax.f32 %v173_v50, 0.0  ;;  %v365_v37 = vld [vmem:[%s693_s5] sm:$0x3] }
  0xe6   :  { %v194_v56 = vmax.f32 %v184_v52, 0.0 }
  0xe7   :  { %v192_v58 = vmax.f32 %v176_v54, 0.0 }
  0xe8   :  { %v198_v59 = vpack.c.bf16 %v194_v56, %v193_v55  ;;  %478 = vmatpush3.bf16.msra.mxu1 %v196_v43 }
  0xe9   :  { %v197_v60 = vpack.c.bf16 %v192_v58, %v191_v57 }
  0xeb   :  { %479 = vmatprep.subr.bf16.mxu1 %v197_v60 }
  0xec   :  { %480 = vmatpush3.bf16.msra.mxu1 %v197_v60 }
  0xed   :  { %481 = vmatprep.subr.bf16.mxu1 %v198_v59 }
  0xf0   :  { %482 = vmatpush3.bf16.msra.mxu1 %v198_v59 }
  0xf3   :  { %484 = vmatmul.mubr.msk.bf16.vlgmr.msra.gmra.mrb[0].mxu1 %vm275_vm2, %v515_v61 }
  0xf4   :  { %487 = vmatprep.mubr.msk.bf16.mxu1 %vm275_vm2, %v516_v62 }
  0xfb   :  { %488 = vmatmul.mubr.msk.bf16.gmra.mrb[4].mxu1 %vm275_vm2, %v517_v63 }
 0x1c6   :  { %v485_v5 = vpop.f32.mrb[0].mxu1 }
 0x1c7   :  { %v331_v6 = vadd.f32 %v485_v5, %v228_v3  ;;  %v322_v7 = vpop.f32.mrb[1].mxu1 }
 0x1c8   :  { %v323_v9 = vadd.f32 %v322_v7, %v218_v1  ;;  %v486_v10 = vpop.f32.mrb[2].mxu1 }
 0x1c9   :  { %v334_v11 = vadd.f32 %v486_v10, %v233_v4  ;;  %v325_v12 = vpop.f32.mrb[3].mxu1  ;;  %v355_v15 = vmax.f32 %v331_v6, 0.0 }
 0x1ca   :  { %v326_v14 = vadd.f32 %v325_v12, %v223_v2  ;;  %v353_v17 = vmax.f32 %v323_v9, 0.0 }
 0x1cb   :  { %v356_v16 = vmax.f32 %v334_v11, 0.0 }
 0x1cc   :  { %v354_v18 = vmax.f32 %v326_v14, 0.0 }
 0x1cd   :  { %v362_v19 = vpack.c.bf16 %v356_v16, %v355_v15 }
 0x1ce   :  { %v361_v21 = vpack.c.bf16 %v354_v18, %v353_v17  ;;  %v489_v22 = vpop.f32.mrb[4].mxu1 }
 0x1cf   :  { %v347_v23 = vadd.f32 %v489_v22, %v248_v20  ;;  %v338_v24 = vpop.f32.mrb[5].mxu1 }
 0x1d0   :  { %v339_v26 = vadd.f32 %v338_v24, %v238_v8  ;;  %v490_v27 = vpop.f32.mrb[6].mxu1  ;;  %492 = vmatpush3.bf16.msra.mxu0 %v361_v21 }
 0x1d1   :  { %v350_v28 = vadd.f32 %v490_v27, %v253_v25  ;;  %v341_v29 = vpop.f32.mrb[7].mxu1  ;;  %493 = vmatprep.subr.bf16.mxu0 %v543_v0  ;;  %v359_v31 = vmax.f32 %v347_v23, 0.0 }
 0x1d2   :  { %v342_v30 = vadd.f32 %v341_v29, %v243_v13  ;;  %v357_v33 = vmax.f32 %v339_v26, 0.0 }
 0x1d3   :  { %v360_v32 = vmax.f32 %v350_v28, 0.0 }
 0x1d4   :  { %v358_v34 = vmax.f32 %v342_v30, 0.0  ;;  %494 = vmatpush3.bf16.msra.mxu0 %v362_v19 }
 0x1d5   :  { %v364_v35 = vpack.c.bf16 %v360_v32, %v359_v31  ;;  %495 = vmatprep.subr.bf16.mxu0 %v543_v0 }
 0x1d6   :  { %v363_v36 = vpack.c.bf16 %v358_v34, %v357_v33 }
 0x1d8   :  { %496 = vmatpush3.bf16.msra.mxu0 %v363_v36 }
 0x1d9   :  { %497 = vmatprep.subr.bf16.mxu0 %v543_v0 }
 0x1dc   :  { %498 = vmatpush3.bf16.msra.mxu0 %v364_v35 }
 0x1df   :  { %500 = vmatmul.mubr.msk.bf16.vlgmr.msra.gmra.mrb[8].mxu0 %vm275_vm2, %v365_v37 }
 0x2b2   :  { %v409_v39 = vpop.f32.mrb[8].mxu0 }
 0x2b3   :  { %v410_v40 = vadd.f32 %v409_v39, %v370_v38  ;;  %v501_v41 = vpop.f32.mrb[9].mxu0 }
 0x2b4   :  { %v412_v42 = vpop.f32.mrb[10].mxu0 }
 0x2b5   :  { %415 = vst [vmem:[#allocation2] sm:$0xf] %v410_v40  ;;  %v502_v43 = vpop.f32.mrb[11].mxu0 }
 0x2b6   :  { %529 = shalt.err (!%p526_p4)
}
 0x2b7   :  { %s530_s28 = scalar_lea.hbm %s695_s7, 64 }
 0x2b8   :  { %p531_p5 = scmp.ne.s32.totalorder %s695_s7, %s530_s28  ;;  %p534_p6 = scmp.lt.u32.totalorder %s530_s28, %s695_s7 }
 0x2ba   :  { %p536_p7 = pnand %p534_p6, %p531_p5 }
 0x2bc   :  { %539 = shalt.err (!%p536_p7)
}
 0x2bd   :  { %425 = dma.vmem_to_hbm [thread:$0]  %s423_s25, 64, %s695_s7, [#allocation3]  }
 0x2be   :  { %540 = dma.done.wait [#allocation3], 64  }
 0x2bf   :  { %541 = vsyncadd [#allocation3], 4294967232 }
 0x2c0   :  { %429 = vsyncpa [#allocation3], 1 }

</bundles_post_ra>
